<compile_context>
chip_gen: v6e
topology: v6e:2x2x1
jax: 0.10.0
libtpu: 0.0.40
codegen_flags: <defaults>
</compile_context>

<pallas_src>
import jax
import jax.numpy as jnp
from jax.experimental import pallas as pl
from jax.experimental.pallas import tpu as pltpu

_LANE = 128
_SUBLANE = 8

_TARGET_BLOCK_BYTES = 4 * 1024 * 1024   # 4 MiB blocks; 2x(in+out) = 16 MiB live
_VMEM_LIMIT_BYTES = 48 << 20            # fits v5e/v6e (128 MiB) and v7x (64 MiB/TC)


def _swish_kernel(x_ref, o_ref):
    x = x_ref[...]
    # Compute in f32 for accuracy (matches torch), cast back to input dtype.
    xf = x.astype(jnp.float32)
    # exp -> EUP; approx reciprocal also goes to the (otherwise idle) EUP slot
    # instead of a multi-op VALU Newton divide.
    sig = pl.reciprocal(1.0 + jnp.exp(-xf), approx=True)
    o_ref[...] = (xf * sig).astype(o_ref.dtype)


def _sublane_multiple(dtype):
    """Packed-tile row multiple: 8 for 32-bit, 16 for bf16/f16, 32 for 8-bit."""
    itemsize = jnp.dtype(dtype).itemsize
    if itemsize >= 4:
        return _SUBLANE
    return _SUBLANE * (4 // itemsize)


def _tensorcore_count():
    """Defensive TC-per-chip query; default to single-TC (v5e/v6e) behavior."""
    try:
        info = pltpu.get_tpu_info()
    except Exception:
        return 1
    for attr in ("num_cores", "num_tensorcores", "tensorcore_count", "core_count"):
        n = getattr(info, attr, None)
        if isinstance(n, int) and n > 0:
            return n
    return 1


def _choose_tile_rows(rows, width, itemsize, sub):
    tile_rows = (_TARGET_BLOCK_BYTES // (width * itemsize)) // sub * sub
    tile_rows = max(sub, tile_rows)
    if tile_rows >= rows:
        # Single block equal to the full array — always a legal block shape.
        return rows

    n_cores = _tensorcore_count()
    # >=2 steps keep DMA-in / compute / DMA-out overlapped; only demand more
    # (>=2 per core) on multi-TC chips — on single-TC chips the grid is a
    # serial loop and shrinking blocks further is pure overhead.
    min_steps = 2 * n_cores
    steps = pl.cdiv(rows, tile_rows)
    if steps < min_steps and rows >= min_steps * sub:
        tile_rows = max(sub, (rows // min_steps) // sub * sub)
        steps = pl.cdiv(rows, tile_rows)

    if n_cores > 1 and steps > 1 and steps % 2:
        # Odd step count => 2-vs-1 imbalance across v7x's two TensorCores on a
        # purely bandwidth-bound kernel; re-target the next even step count.
        even_steps = steps + 1
        cand = max(sub, pl.cdiv(pl.cdiv(rows, even_steps), sub) * sub)
        if pl.cdiv(rows, cand) % 2 == 0:
            tile_rows = cand
    return tile_rows


def _swish_flat_pallas(x_flat):
    """Pallas path for a flat array whose size is a multiple of 128."""
    n = x_flat.size
    dtype = x_flat.dtype
    itemsize = jnp.dtype(dtype).itemsize

    # Lane-dense width that divides n exactly (n % 128 == 0, so width=128
    # always succeeds): wide unmasked vector stores, big DMAs, no padding.
    width = next(w for w in (4096, 2048, 1024, 512, 256, 128) if n % w == 0)
    rows = n // width
    x2d = x_flat.reshape(rows, width)

    sub = _sublane_multiple(dtype)
    tile_rows = _choose_tile_rows(rows, width, itemsize, sub)
    grid = (pl.cdiv(rows, tile_rows),)

    # NOTE: if tile_rows does not divide rows, the last grid block touches
    # out-of-bounds rows; exp of that garbage may be inf/NaN but those lanes
    # are discarded by Pallas' masked stores. Keep this kernel a pure
    # elementwise read of the input ref so this stays harmless.
    out2d = pl.pallas_call(
        _swish_kernel,
        out_shape=jax.ShapeDtypeStruct((rows, width), dtype),
        grid_spec=pltpu.PrefetchScalarGridSpec(
            num_scalar_prefetch=0,
            grid=grid,
            in_specs=[pl.BlockSpec((tile_rows, width), lambda i: (i, 0))],
            out_specs=pl.BlockSpec((tile_rows, width), lambda i: (i, 0)),
        ),
        compiler_params=pltpu.CompilerParams(
            dimension_semantics=("parallel",),
            vmem_limit_bytes=_VMEM_LIMIT_BYTES,
        ),
    )(x2d)
    return out2d.reshape(-1)


def swish_pallas(x, *, min_pallas_bytes=256 * 1024):
    """Elementwise swish: x * sigmoid(x). Matches torch semantics."""
    orig_shape = x.shape
    n_elem = x.size
    itemsize = jnp.dtype(x.dtype).itemsize

    # Tiny inputs: plain jnp beats a pallas_call launch and lets XLA fuse
    # with the producer (skipping the HBM round-trip entirely).
    if n_elem == 0 or n_elem < _LANE or n_elem * itemsize < min_pallas_bytes:
        return x * jax.nn.sigmoid(x)

    x_flat = jnp.ravel(x)
    tail = n_elem % _LANE
    if tail:
        # Ragged element count: run the lane-aligned prefix through the fast
        # kernel and the <128-element remainder through plain jnp; avoids the
        # full-tensor pad + post-slice passes of the naive approach.
        n_main = n_elem - tail
        y_main = _swish_flat_pallas(x_flat[:n_main])
        x_tail = x_flat[n_main:]
        y_tail = x_tail * jax.nn.sigmoid(x_tail)
        return jnp.concatenate([y_main, y_tail]).reshape(orig_shape)

    return _swish_flat_pallas(x_flat).reshape(orig_shape)


if __name__ == "__main__":
    key = jax.random.PRNGKey(0)
    k1, k2, k3, k4 = jax.random.split(key, 4)

    # 1) small NCHW activation, forced through the Pallas path
    x1 = jax.random.normal(k1, (2, 4, 16, 16), dtype=jnp.float32)
    y1 = swish_pallas(x1, min_pallas_bytes=0)
    jax.block_until_ready(y1)
    assert y1.shape == x1.shape and y1.dtype == x1.dtype
    assert jnp.allclose(y1, x1 * jax.nn.sigmoid(x1), atol=1e-2, rtol=1e-2)

    # 2) ragged element count (not a multiple of 128): main/tail split path
    x2 = jax.random.normal(k2, (3, 8, 33, 65), dtype=jnp.float32)
    y2 = swish_pallas(x2, min_pallas_bytes=0)
    jax.block_until_ready(y2)
    assert jnp.allclose(y2, x2 * jax.nn.sigmoid(x2), atol=1e-2, rtol=1e-2)

    # 3) larger input on the default path (multi-step pipelined grid)
    x3 = jax.random.normal(k3, (8, 16, 128, 128), dtype=jnp.float32)
    y3 = swish_pallas(x3)
    jax.block_until_ready(y3)
    assert jnp.allclose(y3, x3 * jax.nn.sigmoid(x3), atol=1e-2, rtol=1e-2)

    # 4) bf16 activations (exercises dtype-aware sublane rounding)
    x4 = jax.random.normal(k4, (4, 8, 64, 64), dtype=jnp.bfloat16)
    y4 = swish_pallas(x4)
    jax.block_until_ready(y4)
    x4f = x4.astype(jnp.float32)
    ref4 = (x4f * jax.nn.sigmoid(x4f)).astype(jnp.bfloat16)
    assert y4.dtype == jnp.bfloat16
    assert jnp.allclose(y4.astype(jnp.float32), ref4.astype(jnp.float32),
                        atol=5e-2, rtol=5e-2)

    print("KERNEL_OK")
</pallas_src>

<mosaic_0001>
module attributes {stable_mosaic.version = 11 : i64} {
  func.func @_swish_kernel(%arg0: i32, %arg1: memref<1x2048xf32, #tpu.memory_space<vmem>>, %arg2: memref<1x2048xf32, #tpu.memory_space<vmem>>) attributes {dimension_semantics = [#tpu.dimension_semantics<parallel>], iteration_bounds = array<i64: 1>, scalar_prefetch = 0 : i64, scratch_operands = 0 : i64, tpu.core_type = #tpu.core_type<tc>, window_params = [{transform_indices = @transform_0, window_bounds = array<i64: 1, 2048>}, {transform_indices = @transform_1, window_bounds = array<i64: 1, 2048>}]} {
    %c0 = arith.constant 0 : index
    %c0_0 = arith.constant 0 : index
    %0 = vector.load %arg1[%c0, %c0_0] : memref<1x2048xf32, #tpu.memory_space<vmem>>, vector<1x2048xf32>
    %cst = arith.constant 0.000000e+00 : f32
    %1 = vector.broadcast %cst : f32 to vector<1x2048xf32>
    %2 = arith.subf %1, %0 : vector<1x2048xf32>
    %3 = math.exp %2 : vector<1x2048xf32>
    %cst_1 = arith.constant 1.000000e+00 : f32
    %4 = vector.broadcast %cst_1 : f32 to vector<1x2048xf32>
    %5 = arith.addf %4, %3 : vector<1x2048xf32>
    %6 = tpu.reciprocal %5 {approx = true} : vector<1x2048xf32> -> vector<1x2048xf32>
    %7 = arith.mulf %0, %6 : vector<1x2048xf32>
    %c0_2 = arith.constant 0 : index
    %c0_3 = arith.constant 0 : index
    %8 = vector.load %arg2[%c0_2, %c0_3] : memref<1x2048xf32, #tpu.memory_space<vmem>>, vector<1x2048xf32>
    tpu.vector_store %arg2[%c0_2, %c0_3], %7 {strides = array<i32>} : memref<1x2048xf32, #tpu.memory_space<vmem>>, vector<1x2048xf32>,
    return
  }
  func.func @transform_0(%arg0: i32) -> (i32, i32) {
    %c0_i32 = arith.constant 0 : i32
    %c0_i32_0 = arith.constant 0 : i32
    return %arg0, %c0_i32 : i32, i32
  }
  func.func @transform_1(%arg0: i32) -> (i32, i32) {
    %c0_i32 = arith.constant 0 : i32
    %c0_i32_0 = arith.constant 0 : i32
    return %arg0, %c0_i32 : i32, i32
  }
}

</mosaic_0001>

<bundles_post_ra>
// kernel: tpu_custom_call.1
= control target key start
LH: loop header
LB: loop body
LE: loop exit
PB: predicated region body
PF: predicated region fallthrough
CT: control target
= control target key end

     0   :  { %6 = vsyncpa [#allocation3], 0  ;;  %s124_s0 = inlined_call_operand.hbm [shape: f32[1,2048], index: 0, kind: input, shape index: {}]   ;;  %s125_s1 = inlined_call_operand.hbm [shape: f32[1,2048], index: 1, kind: output, shape index: {}]  }
   0x1   :  { %7 = vsyncpa [#allocation4], 0  ;;  %s106_s6 = smov [#allocation2]  }
   0x2   :  { %s14_s7 = sshll.u32 %s106_s6, 4  ;;  %s15_s7 = int_to_ptr.vmem [resolvable:$true] %s14_s7 }
   0x3   :  { %s70_s8 = scalar_lea.vmem %s15_s7, 256  ;;  %p75_p1 = scmp.lt.s32.totalorder %s15_s7, %s15_s7 }
   0x4   :  { %p71_p0 = scmp.ne.s32.totalorder %s15_s7, %s70_s8  ;;  %p76_p2 = scmp.lt.s32.totalorder %s70_s8, %s70_s8 }
   0x6   :  { %p77_p3 = por %p76_p2, %p75_p1 }
   0x8   :  { %p78_p4 = pnand %p77_p3, %p71_p0 }
   0xa   :  { %81 = shalt.err (!%p78_p4)
}
   0xb   :  { %17 = dma.hbm_to_vmem [thread:$0]  %s124_s0, 256, %s15_s7, [#allocation3]  }
   0xc   :  { %102 = dma.done.wait [#allocation3], 256  }
   0xd   :  { %103 = vsyncadd [#allocation3], 4294967040  ;;  %v21_v0 = vld [vmem:[#allocation2] sm:$0xff]  ;;  %v22_v1 = vld [vmem:[#allocation2 + $0x8] sm:$0xff]  ;;  %s107_s11 = smov [#allocation5]  }
   0xe   :  { %v23_v2 = vsub.f32 0.0, %v21_v0  ;;  %v24_v3 = vsub.f32 0.0, %v22_v1  ;;  %s43_s12 = sshll.u32 %s107_s11, 4  ;;  %s44_s12 = int_to_ptr.vmem [resolvable:$true] %s43_s12 }
   0xf   :  { %s82_s0 = scalar_lea.vmem %s44_s12, 256  ;;  %p87_p6 = scmp.lt.s32.totalorder %s44_s12, %s44_s12 }
  0x10   :  { %v25_v4 = vmul.f32 1.442695, %v23_v2  ;;  %v27_v5 = vmul.f32 1.442695, %v24_v3  ;;  %p83_p5 = scmp.ne.s32.totalorder %s44_s12, %s82_s0  ;;  %p88_p7 = scmp.lt.s32.totalorder %s82_s0, %s82_s0 }
  0x12   :  { %54 = vpow2.f32 %v25_v4  ;;  %p89_p8 = por %p88_p7, %p87_p6 }
  0x13   :  { %56 = vpow2.f32 %v27_v5 }
  0x14   :  { %p90_p9 = pnand %p89_p8, %p83_p5 }
  0x1f   :  { %v55_v6 = vpop.eup %54 }
  0x20   :  { %v57_v7 = vpop.eup %56  ;;  %v29_v8 = vadd.f32 1.0, %v55_v6 }
  0x21   :  { %v30_v9 = vadd.f32 1.0, %v57_v7 }
  0x22   :  { %58 = vrcp.f32 %v29_v8 }
  0x23   :  { %60 = vrcp.f32 %v30_v9 }
  0x2f   :  { %v59_v10 = vpop.eup %58 }
  0x30   :  { %v61_v11 = vpop.eup %60  ;;  %v33_v12 = vmul.f32 %v59_v10, %v21_v0 }
  0x31   :  { %v34_v13 = vmul.f32 %v61_v11, %v22_v1 }
  0x32   :  { %35 = vst [vmem:[#allocation5] sm:$0xff] %v33_v12 }
  0x33   :  { %36 = vst [vmem:[#allocation5 + $0x8] sm:$0xff] %v34_v13 }
  0x34   :  { %93 = shalt.err (!%p90_p9)
}
  0x35   :  { %46 = dma.vmem_to_hbm [thread:$0]  %s44_s12, 256, %s125_s1, [#allocation4]  }
  0x36   :  { %104 = dma.done.wait [#allocation4], 256  }
  0x37   :  { %105 = vsyncadd [#allocation4], 4294967040 }
  0x38   :  { %50 = vsyncpa [#allocation3], 1 }
  0x39   :  { %51 = vsyncpa [#allocation4], 1 }

</bundles_post_ra>
